<compile_context>
chip_gen: v7x
topology: tpu7x:2x2x1
jax: 0.10.0
libtpu: 0.0.40
codegen_flags: <defaults>
</compile_context>

<pallas_src>
import math

import numpy as np

import jax
import jax.numpy as jnp
from jax import lax
from jax.experimental import pallas as pl
from jax.experimental.pallas import tpu as pltpu


def roi_align_level(feat, rois_xyxy, batch_ids, scale, out_size, sampling_ratio,
                    compute_dtype=jnp.bfloat16, c_tile=64):
    """ROIAlign of a set of ROIs against one FPN level's feature map.

    feat:        [B, C, H, W]
    rois_xyxy:   [N, 4] float32 (x1, y1, x2, y2) in image coordinates
    batch_ids:   [N]    int32   image index of each roi
    returns      [N, C, out_size, out_size] in feat.dtype
    """
    B, C, H, W = feat.shape
    N = rois_xyxy.shape[0]
    out_dtype = feat.dtype
    sr = int(sampling_ratio)
    inv_n = 1.0 / float(sr * sr)
    scale = float(scale)

    if N == 0:
        return jnp.zeros((0, C, out_size, out_size), out_dtype)

    c_t = min(C, c_tile)
    n_ct = pl.cdiv(C, c_t)

    feat_k = feat.astype(compute_dtype)

    def kernel(bids_ref, rois_ref, feat_ref, out_ref):
        i = pl.program_id(1)                       # ROI index (inner grid axis)

        # legacy / non-aligned ROIAlign coordinates (maskrcnn_benchmark semantics)
        x1 = rois_ref[i, 0] * scale
        y1 = rois_ref[i, 1] * scale
        x2 = rois_ref[i, 2] * scale
        y2 = rois_ref[i, 3] * scale
        roi_w = jnp.maximum(x2 - x1, 1.0)
        roi_h = jnp.maximum(y2 - y1, 1.0)
        bin_w = roi_w / out_size
        bin_h = roi_h / out_size

        # Separable interpolation weights (closed-form triangular kernel, exactly equal to the
        # clamped bilinear corner weights of ROIAlign; validity factorizes as valid_y * valid_x).
        ph = lax.broadcasted_iota(jnp.int32, (out_size, 1), 0).astype(jnp.float32)   # [out, 1]
        hh = lax.broadcasted_iota(jnp.int32, (1, H), 1).astype(jnp.float32)          # [1, H]
        pw = lax.broadcasted_iota(jnp.int32, (1, out_size), 1).astype(jnp.float32)   # [1, out]
        ww = lax.broadcasted_iota(jnp.int32, (W, 1), 0).astype(jnp.float32)          # [W, 1]

        wy = jnp.zeros((out_size, H), jnp.float32)           # [out, H]
        wx_t = jnp.zeros((W, out_size), jnp.float32)         # [W, out]  (already MXU-oriented)
        for s in range(sr):
            y = y1 + ph * bin_h + (s + 0.5) * bin_h / sr               # [out, 1]
            vy = ((y >= -1.0) & (y <= float(H))).astype(jnp.float32)
            yc = jnp.clip(y, 0.0, float(H - 1))
            wy = wy + vy * jnp.maximum(1.0 - jnp.abs(yc - hh), 0.0)

            x = x1 + pw * bin_w + (s + 0.5) * bin_w / sr               # [1, out]
            vx = ((x >= -1.0) & (x <= float(W))).astype(jnp.float32)
            xc = jnp.clip(x, 0.0, float(W - 1))
            wx_t = wx_t + vx * jnp.maximum(1.0 - jnp.abs(xc - ww), 0.0)
        wy = wy * inv_n                                      # fold the 1/(sr*sr) sample average

        f = feat_ref[0]                                      # [c_t, H, W], compute_dtype
        wxb = jnp.broadcast_to(wx_t.astype(f.dtype)[None], (c_t, W, out_size))
        # T[c, H, out] = feat[c, H, W] @ WxT[W, out]   (batched over channels, f32 accumulate)
        t = lax.dot_general(f, wxb, (((2,), (1,)), ((0,), (0,))),
                            preferred_element_type=jnp.float32)
        wyb = jnp.broadcast_to(wy[None], (c_t, out_size, H))
        # P[c, out, out] = Wy[out, H] @ T[c, H, out]
        p = lax.dot_general(wyb, t, (((2,), (1,)), ((0,), (0,))),
                            preferred_element_type=jnp.float32)
        out_ref[0] = p.astype(out_ref.dtype)

    blk_in = c_t * H * W * jnp.dtype(compute_dtype).itemsize
    blk_out = c_t * out_size * out_size * jnp.dtype(out_dtype).itemsize
    vmem_limit = int(min(100 * 2**20, max(32 * 2**20, 4 * (blk_in + blk_out) + (8 << 20))))

    # TODO(synk): ROIs are processed one per grid step; batching R ROIs per step would fill more
    # MXU output columns and make the output stores lane-dense.
    grid_spec = pltpu.PrefetchScalarGridSpec(
        num_scalar_prefetch=2,
        grid=(n_ct, N),            # ROI axis innermost: consecutive same-image ROIs reuse the DMA'd block
        in_specs=[
            pl.BlockSpec((1, c_t, H, W), lambda ct, i, bids, rois: (bids[i], ct, 0, 0)),
        ],
        out_specs=pl.BlockSpec((1, c_t, out_size, out_size),
                               lambda ct, i, bids, rois: (i, ct, 0, 0)),
    )

    out = pl.pallas_call(
        kernel,
        out_shape=jax.ShapeDtypeStruct((N, C, out_size, out_size), out_dtype),
        grid_spec=grid_spec,
        compiler_params=pltpu.CompilerParams(
            dimension_semantics=("parallel", "parallel"),
            vmem_limit_bytes=vmem_limit),
    )(batch_ids.astype(jnp.int32), rois_xyxy.astype(jnp.float32), feat_k)
    return out


def pooler_forward(features, boxes, scales, output_size=7, sampling_ratio=2,
                   canonical_scale=224, canonical_level=4, eps=1e-6,
                   compute_dtype=jnp.bfloat16):
    """features: list of [B, C, H_l, W_l]; boxes: list (per image) of [n_i, 4] xyxy."""
    # convert_to_roi_format (glue)
    concat_boxes = jnp.concatenate([b.astype(jnp.float32) for b in boxes], axis=0)
    batch_ids = jnp.concatenate(
        [jnp.full((b.shape[0],), i, dtype=jnp.int32) for i, b in enumerate(boxes)], axis=0)

    if len(features) == 1:
        return roi_align_level(features[0], concat_boxes, batch_ids, float(scales[0]),
                               output_size, sampling_ratio, compute_dtype=compute_dtype)

    # LevelMapper (glue).  BoxList.area() in xyxy mode uses +1 (TO_REMOVE).
    TO_REMOVE = 1.0
    areas = ((concat_boxes[:, 2] - concat_boxes[:, 0] + TO_REMOVE) *
             (concat_boxes[:, 3] - concat_boxes[:, 1] + TO_REMOVE))
    k_min = -math.log2(scales[0])
    k_max = -math.log2(scales[-1])
    s = jnp.sqrt(areas)
    target_lvls = jnp.floor(canonical_level + jnp.log2(s / canonical_scale + eps))
    target_lvls = jnp.clip(target_lvls, k_min, k_max)
    levels = target_lvls.astype(jnp.int32) - int(k_min)

    N = concat_boxes.shape[0]
    C = features[0].shape[1]
    out_dtype = features[0].dtype
    result = jnp.zeros((N, C, output_size, output_size), out_dtype)

    # Per-level grouping: each ROI is pooled on exactly ONE level (matches PyTorch's
    # nonzero + scatter, and removes the (L-1)/L wasted work of pooling every ROI everywhere).
    # TODO(synk): this host-side grouping needs concrete (non-traced) boxes; under jit it would
    # be replaced by MoE-style scalar-prefetched group offsets inside a single pallas_call.
    levels_np = np.asarray(jax.device_get(levels))
    for level, (feat, scale) in enumerate(zip(features, scales)):
        idx = np.nonzero(levels_np == level)[0]
        if idx.size == 0:
            continue
        idx_j = jnp.asarray(idx, dtype=jnp.int32)
        pooled = roi_align_level(feat, concat_boxes[idx_j], batch_ids[idx_j],
                                 float(scale), output_size, sampling_ratio,
                                 compute_dtype=compute_dtype)
        result = result.at[idx_j].set(pooled.astype(out_dtype))
    return result


# ----------------------------- pure NumPy reference ---------------------------------------------


def _roi_align_ref_np(feat, roi, scale, out_size, sr):
    C, H, W = feat.shape
    x1, y1, x2, y2 = [float(v) * scale for v in roi]
    roi_w = max(x2 - x1, 1.0)
    roi_h = max(y2 - y1, 1.0)
    bin_w = roi_w / out_size
    bin_h = roi_h / out_size
    out = np.zeros((C, out_size, out_size), np.float64)
    for phh in range(out_size):
        for pww in range(out_size):
            acc = np.zeros((C,), np.float64)
            for iy in range(sr):
                y = y1 + phh * bin_h + (iy + 0.5) * bin_h / sr
                for ix in range(sr):
                    x = x1 + pww * bin_w + (ix + 0.5) * bin_w / sr
                    if y < -1.0 or y > H or x < -1.0 or x > W:
                        continue
                    yc, xc = max(y, 0.0), max(x, 0.0)
                    y_low, x_low = int(yc), int(xc)
                    if y_low >= H - 1:
                        y_low = y_high = H - 1
                        yv = float(y_low)
                    else:
                        y_high = y_low + 1
                        yv = yc
                    if x_low >= W - 1:
                        x_low = x_high = W - 1
                        xv = float(x_low)
                    else:
                        x_high = x_low + 1
                        xv = xc
                    ly, lx = yv - y_low, xv - x_low
                    hy, hx = 1.0 - ly, 1.0 - lx
                    acc += (hy * hx * feat[:, y_low, x_low] + hy * lx * feat[:, y_low, x_high] +
                            ly * hx * feat[:, y_high, x_low] + ly * lx * feat[:, y_high, x_high])
            out[:, phh, pww] = acc / (sr * sr)
    return out


def _pooler_ref_np(features, boxes, scales, out_size, sr,
                   canonical_scale=224, canonical_level=4, eps=1e-6):
    feats = [np.asarray(f, np.float64) for f in features]
    boxes_np = [np.asarray(b, np.float64) for b in boxes]
    concat = np.concatenate(boxes_np, axis=0)
    bids = np.concatenate([np.full((b.shape[0],), i, np.int64) for i, b in enumerate(boxes_np)])
    k_min, k_max = -math.log2(scales[0]), -math.log2(scales[-1])
    areas = (concat[:, 2] - concat[:, 0] + 1.0) * (concat[:, 3] - concat[:, 1] + 1.0)
    lvls = np.clip(np.floor(canonical_level + np.log2(np.sqrt(areas) / canonical_scale + eps)),
                   k_min, k_max).astype(np.int64) - int(k_min)
    N, C = concat.shape[0], feats[0].shape[1]
    out = np.zeros((N, C, out_size, out_size), np.float64)
    for n in range(N):
        lvl = int(lvls[n])
        out[n] = _roi_align_ref_np(feats[lvl][int(bids[n])], concat[n],
                                   float(scales[lvl]), out_size, sr)
    return out


if __name__ == "__main__":
    key = jax.random.PRNGKey(0)
    k0, k1 = jax.random.split(key)

    B, C = 2, 4
    scales = (0.25, 0.125)            # 2 FPN levels -> 16x16 and 8x8 feature maps for a 64x64 image
    features = [
        jax.random.normal(k0, (B, C, 16, 16), dtype=jnp.float32),
        jax.random.normal(k1, (B, C, 8, 8), dtype=jnp.float32),
    ]

    # boxes per image, xyxy in image coordinates; sizes chosen to hit both levels
    boxes = [
        jnp.array([[4.0, 4.0, 20.0, 24.0],
                   [10.0, 8.0, 50.0, 40.0],
                   [0.0, 0.0, 130.0, 120.0]], dtype=jnp.float32),
        jnp.array([[6.0, 2.0, 30.0, 34.0],
                   [1.0, 1.0, 62.0, 63.0]], dtype=jnp.float32),
    ]

    out = pooler_forward(features, boxes, scales, output_size=7, sampling_ratio=2)
    out = jax.block_until_ready(out)
    assert out.shape == (5, C, 7, 7), out.shape
    assert bool(jnp.all(jnp.isfinite(out)))

    ref = _pooler_ref_np(features, boxes, scales, 7, 2)
    np.testing.assert_allclose(np.asarray(out, dtype=np.float64), ref, rtol=3e-2, atol=3e-2)

    print("KERNEL_OK")
</pallas_src>

<mosaic_0001>
module attributes {stable_mosaic.version = 11 : i64} {
  func.func @kernel(%arg0: i32, %arg1: i32, %arg2: memref<4xi32, #tpu.memory_space<smem>>, %arg3: memref<4x4xf32, #tpu.memory_space<smem>>, %arg4: memref<1x4x16x16xbf16, #tpu.memory_space<vmem>>, %arg5: memref<1x4x7x7xf32, #tpu.memory_space<vmem>>) attributes {dimension_semantics = [#tpu.dimension_semantics<parallel>, #tpu.dimension_semantics<parallel>], iteration_bounds = array<i64: 1, 4>, scalar_prefetch = 2 : i64, scratch_operands = 0 : i64, tpu.core_type = #tpu.core_type<tc>, window_params = [{transform_indices = @transform_0, window_bounds = array<i64: 1, 4, 16, 16>}, {transform_indices = @transform_1, window_bounds = array<i64: 1, 4, 7, 7>}]} {
    %0 = arith.index_cast %arg1 : i32 to index
    %c0 = arith.constant 0 : index
    %1 = memref.load %arg3[%0, %c0] : memref<4x4xf32, #tpu.memory_space<smem>>
    %cst = arith.constant 2.500000e-01 : f32
    %2 = arith.mulf %1, %cst : f32
    %3 = arith.index_cast %arg1 : i32 to index
    %c1 = arith.constant 1 : index
    %4 = memref.load %arg3[%3, %c1] : memref<4x4xf32, #tpu.memory_space<smem>>
    %cst_0 = arith.constant 2.500000e-01 : f32
    %5 = arith.mulf %4, %cst_0 : f32
    %6 = arith.index_cast %arg1 : i32 to index
    %c2 = arith.constant 2 : index
    %7 = memref.load %arg3[%6, %c2] : memref<4x4xf32, #tpu.memory_space<smem>>
    %cst_1 = arith.constant 2.500000e-01 : f32
    %8 = arith.mulf %7, %cst_1 : f32
    %9 = arith.index_cast %arg1 : i32 to index
    %c3 = arith.constant 3 : index
    %10 = memref.load %arg3[%9, %c3] : memref<4x4xf32, #tpu.memory_space<smem>>
    %cst_2 = arith.constant 2.500000e-01 : f32
    %11 = arith.mulf %10, %cst_2 : f32
    %12 = arith.subf %8, %2 : f32
    %cst_3 = arith.constant 1.000000e+00 : f32
    %13 = arith.maximumf %12, %cst_3 : f32
    %14 = arith.subf %11, %5 : f32
    %cst_4 = arith.constant 1.000000e+00 : f32
    %15 = arith.maximumf %14, %cst_4 : f32
    %cst_5 = arith.constant 7.000000e+00 : f32
    %16 = arith.divf %13, %cst_5 : f32
    %cst_6 = arith.constant 7.000000e+00 : f32
    %17 = arith.divf %15, %cst_6 : f32
    %18 = tpu.iota {dimensions = array<i32: 0>} : vector<7x1xi32>
    %19 = arith.sitofp %18 : vector<7x1xi32> to vector<7x1xf32>
    %20 = tpu.iota {dimensions = array<i32: 1>} : vector<1x16xi32>
    %21 = arith.sitofp %20 : vector<1x16xi32> to vector<1x16xf32>
    %22 = tpu.iota {dimensions = array<i32: 1>} : vector<1x7xi32>
    %23 = arith.sitofp %22 : vector<1x7xi32> to vector<1x7xf32>
    %24 = tpu.iota {dimensions = array<i32: 0>} : vector<16x1xi32>
    %25 = arith.sitofp %24 : vector<16x1xi32> to vector<16x1xf32>
    %cst_7 = arith.constant 0.000000e+00 : f32
    %26 = vector.broadcast %cst_7 : f32 to vector<7x16xf32>
    %cst_8 = arith.constant 0.000000e+00 : f32
    %27 = vector.broadcast %cst_8 : f32 to vector<16x7xf32>
    %28 = vector.broadcast %17 : f32 to vector<7x1xf32>
    %29 = arith.mulf %19, %28 : vector<7x1xf32>
    %30 = vector.broadcast %5 : f32 to vector<7x1xf32>
    %31 = arith.addf %30, %29 : vector<7x1xf32>
    %cst_9 = arith.constant 5.000000e-01 : f32
    %32 = arith.mulf %cst_9, %17 : f32
    %cst_10 = arith.constant 2.000000e+00 : f32
    %33 = arith.divf %32, %cst_10 : f32
    %34 = vector.broadcast %33 : f32 to vector<7x1xf32>
    %35 = arith.addf %31, %34 : vector<7x1xf32>
    %cst_11 = arith.constant -1.000000e+00 : f32
    %36 = vector.broadcast %cst_11 : f32 to vector<7x1xf32>
    %37 = arith.cmpf oge, %35, %36 : vector<7x1xf32>
    %cst_12 = arith.constant 1.600000e+01 : f32
    %38 = vector.broadcast %cst_12 : f32 to vector<7x1xf32>
    %39 = arith.cmpf ole, %35, %38 : vector<7x1xf32>
    %40 = arith.andi %37, %39 : vector<7x1xi1>
    %41 = arith.extui %40 : vector<7x1xi1> to vector<7x1xi32>
    %42 = arith.sitofp %41 : vector<7x1xi32> to vector<7x1xf32>
    %cst_13 = arith.constant 0.000000e+00 : f32
    %cst_14 = arith.constant 1.500000e+01 : f32
    %43 = vector.broadcast %cst_13 : f32 to vector<7x1xf32>
    %44 = arith.maximumf %43, %35 : vector<7x1xf32>
    %45 = vector.broadcast %cst_14 : f32 to vector<7x1xf32>
    %46 = arith.minimumf %45, %44 : vector<7x1xf32>
    %47 = vector.broadcast %46 : vector<7x1xf32> to vector<7x16xf32>
    %48 = vector.broadcast %21 : vector<1x16xf32> to vector<7x16xf32>
    %49 = arith.subf %47, %48 : vector<7x16xf32>
    %50 = math.absf %49 : vector<7x16xf32>
    %cst_15 = arith.constant 1.000000e+00 : f32
    %51 = vector.broadcast %cst_15 : f32 to vector<7x16xf32>
    %52 = arith.subf %51, %50 : vector<7x16xf32>
    %cst_16 = arith.constant 0.000000e+00 : f32
    %53 = vector.broadcast %cst_16 : f32 to vector<7x16xf32>
    %54 = arith.maximumf %52, %53 : vector<7x16xf32>
    %55 = vector.broadcast %42 : vector<7x1xf32> to vector<7x16xf32>
    %56 = arith.mulf %55, %54 : vector<7x16xf32>
    %57 = arith.addf %26, %56 : vector<7x16xf32>
    %58 = vector.broadcast %16 : f32 to vector<1x7xf32>
    %59 = arith.mulf %23, %58 : vector<1x7xf32>
    %60 = vector.broadcast %2 : f32 to vector<1x7xf32>
    %61 = arith.addf %60, %59 : vector<1x7xf32>
    %cst_17 = arith.constant 5.000000e-01 : f32
    %62 = arith.mulf %cst_17, %16 : f32
    %cst_18 = arith.constant 2.000000e+00 : f32
    %63 = arith.divf %62, %cst_18 : f32
    %64 = vector.broadcast %63 : f32 to vector<1x7xf32>
    %65 = arith.addf %61, %64 : vector<1x7xf32>
    %cst_19 = arith.constant -1.000000e+00 : f32
    %66 = vector.broadcast %cst_19 : f32 to vector<1x7xf32>
    %67 = arith.cmpf oge, %65, %66 : vector<1x7xf32>
    %cst_20 = arith.constant 1.600000e+01 : f32
    %68 = vector.broadcast %cst_20 : f32 to vector<1x7xf32>
    %69 = arith.cmpf ole, %65, %68 : vector<1x7xf32>
    %70 = arith.andi %67, %69 : vector<1x7xi1>
    %71 = arith.extui %70 : vector<1x7xi1> to vector<1x7xi32>
    %72 = arith.sitofp %71 : vector<1x7xi32> to vector<1x7xf32>
    %cst_21 = arith.constant 0.000000e+00 : f32
    %cst_22 = arith.constant 1.500000e+01 : f32
    %73 = vector.broadcast %cst_21 : f32 to vector<1x7xf32>
    %74 = arith.maximumf %73, %65 : vector<1x7xf32>
    %75 = vector.broadcast %cst_22 : f32 to vector<1x7xf32>
    %76 = arith.minimumf %75, %74 : vector<1x7xf32>
    %77 = vector.broadcast %76 : vector<1x7xf32> to vector<16x7xf32>
    %78 = vector.broadcast %25 : vector<16x1xf32> to vector<16x7xf32>
    %79 = arith.subf %77, %78 : vector<16x7xf32>
    %80 = math.absf %79 : vector<16x7xf32>
    %cst_23 = arith.constant 1.000000e+00 : f32
    %81 = vector.broadcast %cst_23 : f32 to vector<16x7xf32>
    %82 = arith.subf %81, %80 : vector<16x7xf32>
    %cst_24 = arith.constant 0.000000e+00 : f32
    %83 = vector.broadcast %cst_24 : f32 to vector<16x7xf32>
    %84 = arith.maximumf %82, %83 : vector<16x7xf32>
    %85 = vector.broadcast %72 : vector<1x7xf32> to vector<16x7xf32>
    %86 = arith.mulf %85, %84 : vector<16x7xf32>
    %87 = arith.addf %27, %86 : vector<16x7xf32>
    %88 = vector.broadcast %17 : f32 to vector<7x1xf32>
    %89 = arith.mulf %19, %88 : vector<7x1xf32>
    %90 = vector.broadcast %5 : f32 to vector<7x1xf32>
    %91 = arith.addf %90, %89 : vector<7x1xf32>
    %cst_25 = arith.constant 1.500000e+00 : f32
    %92 = arith.mulf %cst_25, %17 : f32
    %cst_26 = arith.constant 2.000000e+00 : f32
    %93 = arith.divf %92, %cst_26 : f32
    %94 = vector.broadcast %93 : f32 to vector<7x1xf32>
    %95 = arith.addf %91, %94 : vector<7x1xf32>
    %cst_27 = arith.constant -1.000000e+00 : f32
    %96 = vector.broadcast %cst_27 : f32 to vector<7x1xf32>
    %97 = arith.cmpf oge, %95, %96 : vector<7x1xf32>
    %cst_28 = arith.constant 1.600000e+01 : f32
    %98 = vector.broadcast %cst_28 : f32 to vector<7x1xf32>
    %99 = arith.cmpf ole, %95, %98 : vector<7x1xf32>
    %100 = arith.andi %97, %99 : vector<7x1xi1>
    %101 = arith.extui %100 : vector<7x1xi1> to vector<7x1xi32>
    %102 = arith.sitofp %101 : vector<7x1xi32> to vector<7x1xf32>
    %cst_29 = arith.constant 0.000000e+00 : f32
    %cst_30 = arith.constant 1.500000e+01 : f32
    %103 = vector.broadcast %cst_29 : f32 to vector<7x1xf32>
    %104 = arith.maximumf %103, %95 : vector<7x1xf32>
    %105 = vector.broadcast %cst_30 : f32 to vector<7x1xf32>
    %106 = arith.minimumf %105, %104 : vector<7x1xf32>
    %107 = vector.broadcast %106 : vector<7x1xf32> to vector<7x16xf32>
    %108 = vector.broadcast %21 : vector<1x16xf32> to vector<7x16xf32>
    %109 = arith.subf %107, %108 : vector<7x16xf32>
    %110 = math.absf %109 : vector<7x16xf32>
    %cst_31 = arith.constant 1.000000e+00 : f32
    %111 = vector.broadcast %cst_31 : f32 to vector<7x16xf32>
    %112 = arith.subf %111, %110 : vector<7x16xf32>
    %cst_32 = arith.constant 0.000000e+00 : f32
    %113 = vector.broadcast %cst_32 : f32 to vector<7x16xf32>
    %114 = arith.maximumf %112, %113 : vector<7x16xf32>
    %115 = vector.broadcast %102 : vector<7x1xf32> to vector<7x16xf32>
    %116 = arith.mulf %115, %114 : vector<7x16xf32>
    %117 = arith.addf %57, %116 : vector<7x16xf32>
    %118 = vector.broadcast %16 : f32 to vector<1x7xf32>
    %119 = arith.mulf %23, %118 : vector<1x7xf32>
    %120 = vector.broadcast %2 : f32 to vector<1x7xf32>
    %121 = arith.addf %120, %119 : vector<1x7xf32>
    %cst_33 = arith.constant 1.500000e+00 : f32
    %122 = arith.mulf %cst_33, %16 : f32
    %cst_34 = arith.constant 2.000000e+00 : f32
    %123 = arith.divf %122, %cst_34 : f32
    %124 = vector.broadcast %123 : f32 to vector<1x7xf32>
    %125 = arith.addf %121, %124 : vector<1x7xf32>
    %cst_35 = arith.constant -1.000000e+00 : f32
    %126 = vector.broadcast %cst_35 : f32 to vector<1x7xf32>
    %127 = arith.cmpf oge, %125, %126 : vector<1x7xf32>
    %cst_36 = arith.constant 1.600000e+01 : f32
    %128 = vector.broadcast %cst_36 : f32 to vector<1x7xf32>
    %129 = arith.cmpf ole, %125, %128 : vector<1x7xf32>
    %130 = arith.andi %127, %129 : vector<1x7xi1>
    %131 = arith.extui %130 : vector<1x7xi1> to vector<1x7xi32>
    %132 = arith.sitofp %131 : vector<1x7xi32> to vector<1x7xf32>
    %cst_37 = arith.constant 0.000000e+00 : f32
    %cst_38 = arith.constant 1.500000e+01 : f32
    %133 = vector.broadcast %cst_37 : f32 to vector<1x7xf32>
    %134 = arith.maximumf %133, %125 : vector<1x7xf32>
    %135 = vector.broadcast %cst_38 : f32 to vector<1x7xf32>
    %136 = arith.minimumf %135, %134 : vector<1x7xf32>
    %137 = vector.broadcast %136 : vector<1x7xf32> to vector<16x7xf32>
    %138 = vector.broadcast %25 : vector<16x1xf32> to vector<16x7xf32>
    %139 = arith.subf %137, %138 : vector<16x7xf32>
    %140 = math.absf %139 : vector<16x7xf32>
    %cst_39 = arith.constant 1.000000e+00 : f32
    %141 = vector.broadcast %cst_39 : f32 to vector<16x7xf32>
    %142 = arith.subf %141, %140 : vector<16x7xf32>
    %cst_40 = arith.constant 0.000000e+00 : f32
    %143 = vector.broadcast %cst_40 : f32 to vector<16x7xf32>
    %144 = arith.maximumf %142, %143 : vector<16x7xf32>
    %145 = vector.broadcast %132 : vector<1x7xf32> to vector<16x7xf32>
    %146 = arith.mulf %145, %144 : vector<16x7xf32>
    %147 = arith.addf %87, %146 : vector<16x7xf32>
    %cst_41 = arith.constant 2.500000e-01 : f32
    %148 = vector.broadcast %cst_41 : f32 to vector<7x16xf32>
    %149 = arith.mulf %117, %148 : vector<7x16xf32>
    %c0_42 = arith.constant 0 : index
    %c0_43 = arith.constant 0 : index
    %c0_44 = arith.constant 0 : index
    %c0_45 = arith.constant 0 : index
    %150 = vector.load %arg4[%c0_42, %c0_43, %c0_44, %c0_45] : memref<1x4x16x16xbf16, #tpu.memory_space<vmem>>, vector<1x4x16x16xbf16>
    %151 = vector.shape_cast %150 : vector<1x4x16x16xbf16> to vector<4x16x16xbf16>
    %152 = arith.truncf %147 : vector<16x7xf32> to vector<16x7xbf16>
    %153 = vector.shape_cast %152 : vector<16x7xbf16> to vector<1x16x7xbf16>
    %154 = vector.shape_cast %153 : vector<1x16x7xbf16> to vector<1x16x7xbf16>
    %155 = vector.broadcast %154 : vector<1x16x7xbf16> to vector<4x16x7xbf16>
    %cst_46 = arith.constant dense<0.000000e+00> : vector<4x16x7xf32>
    %156 = tpu.matmul %151, %155, %cst_46 {dimension_numbers = #tpu.dot_dimension_numbers<[2], [1], [1], [2], [0, 0, 0, 1, 1, 2], [0], [0]>} : vector<4x16x16xbf16>, vector<4x16x7xbf16>, vector<4x16x7xf32> -> vector<4x16x7xf32>
    %157 = vector.shape_cast %149 : vector<7x16xf32> to vector<1x7x16xf32>
    %158 = vector.shape_cast %157 : vector<1x7x16xf32> to vector<1x7x16xf32>
    %159 = vector.broadcast %158 : vector<1x7x16xf32> to vector<4x7x16xf32>
    %cst_47 = arith.constant dense<0.000000e+00> : vector<4x7x7xf32>
    %160 = tpu.matmul %159, %156, %cst_47 {dimension_numbers = #tpu.dot_dimension_numbers<[2], [1], [1], [2], [0, 0, 0, 1, 1, 2], [0], [0]>} : vector<4x7x16xf32>, vector<4x16x7xf32>, vector<4x7x7xf32> -> vector<4x7x7xf32>
    %c0_48 = arith.constant 0 : index
    %c0_49 = arith.constant 0 : index
    %c0_50 = arith.constant 0 : index
    %c0_51 = arith.constant 0 : index
    %161 = vector.load %arg5[%c0_48, %c0_49, %c0_50, %c0_51] : memref<1x4x7x7xf32, #tpu.memory_space<vmem>>, vector<1x4x7x7xf32>
    %162 = vector.shape_cast %161 : vector<1x4x7x7xf32> to vector<4x7x7xf32>
    %163 = vector.shape_cast %160 : vector<4x7x7xf32> to vector<1x4x7x7xf32>
    tpu.vector_store %arg5[%c0_48, %c0_49, %c0_50, %c0_51], %163 {strides = array<i32>} : memref<1x4x7x7xf32, #tpu.memory_space<vmem>>, vector<1x4x7x7xf32>,
    return
  }
  func.func @transform_0(%arg0: i32, %arg1: i32, %arg2: memref<4xi32, #tpu.memory_space<smem>>, %arg3: memref<4x4xf32, #tpu.memory_space<smem>>) -> (i32, i32, i32, i32) {
    %0 = arith.index_cast %arg1 : i32 to index
    %1 = memref.load %arg2[%0] : memref<4xi32, #tpu.memory_space<smem>>
    %c0_i32 = arith.constant 0 : i32
    %c0_i32_0 = arith.constant 0 : i32
    %c0_i32_1 = arith.constant 0 : i32
    return %1, %arg0, %c0_i32, %c0_i32_0 : i32, i32, i32, i32
  }
  func.func @transform_1(%arg0: i32, %arg1: i32, %arg2: memref<4xi32, #tpu.memory_space<smem>>, %arg3: memref<4x4xf32, #tpu.memory_space<smem>>) -> (i32, i32, i32, i32) {
    %c0_i32 = arith.constant 0 : i32
    %c0_i32_0 = arith.constant 0 : i32
    %c0_i32_1 = arith.constant 0 : i32
    return %arg1, %arg0, %c0_i32, %c0_i32_0 : i32, i32, i32, i32
  }
}

</mosaic_0001>

<bundles_post_ra>
// kernel: tpu_custom_call.1
= control target key start
LH: loop header
LB: loop body
LE: loop exit
PB: predicated region body
PF: predicated region fallthrough
CT: control target
= control target key end

     0   :  { %s1422_s0 = inlined_call_operand.hbm [shape: s32[4], index: 0, kind: input, shape index: {}]   ;;  %s1423_s2 = inlined_call_operand.hbm [shape: bf16[2,4,16,16], index: 2, kind: input, shape index: {}]   ;;  %s1424_s3 = inlined_call_operand.vmem [shape: f32[4,4,7,7], index: 3, kind: output, shape index: {}]   ;;  %s1425_s1 = inlined_call_operand.hbm [shape: f32[4,4], index: 1, kind: input, shape index: {}]  }
   0x1   :  { %s1082_s14 = scalar_lea.hbm %s1422_s0, 16 }
   0x2   :  { %p1083_p0 = scmp.ne.s32.totalorder %s1422_s0, %s1082_s14  ;;  %p1086_p1 = scmp.lt.u32.totalorder %s1082_s14, %s1422_s0 }
   0x4   :  { %p1088_p2 = pnand %p1086_p1, %p1083_p0 }
   0x6   :  { %1091 = shalt.err (!%p1088_p2)  }
   0x7   :  { %s1186_s19 = smov [#allocation3]   ;;  %s1092_s24 = scalar_lea.hbm %s1425_s1, 64 }
   0x8   :  { %9 = dma.hbm_to_smem %s1422_s0, 16, %s1186_s19, [#allocation2] }
   0x9   :  { %p1093_p3 = scmp.ne.s32.totalorder %s1425_s1, %s1092_s24  ;;  %p1096_p4 = scmp.lt.u32.totalorder %s1092_s24, %s1425_s1 }
   0xb   :  { %p1098_p5 = pnand %p1096_p4, %p1093_p3 }
   0xd   :  { %1101 = shalt.err (!%p1098_p5)  }
   0xe   :  { %s1187_s29 = smov [#allocation4]  }
   0xf   :  { %11 = dma.hbm_to_smem %s1425_s1, 64, %s1187_s29, [#allocation2] }
  0x10   :  { %1156 = dma.done.wait [#allocation2], 80 }
  0x11   :  { %1157 = vsyncadd [#allocation2], 4294967216 }
  0x12   :  { %13 = sfence }
  0x13   :  { %14 = vsyncpa [#allocation6], 0 }
  0x14   :  { %16 = vsyncpa [#allocation6 + $0x1], 0  ;;  %s1239_s0 = smov 0   ;;  %s1241_s5 = smov 0  }
  0x15   :  { %s1243_s6 = smov 0   ;;  %s1245_s7 = smov 0  }
  0x16   :  { %s1247_s8 = smov 0   ;;  %s1249_s9 = smov 0  }
  0x17 LB: > { %s31_s1 = sadd.s32 1, %s1180_s8  ;;  %s895_s10 = sadd.s32 4294967295, %s1184_s9   ;;  %s1184_s9 = sphi %s1249_s9, %s22_s9   ;;  %s1180_s8 = sphi %s1247_s8, %s1435_s8   ;;  %s1176_s7 = sphi %s1245_s7, %s1434_s7   ;;  %s1172_s6 = sphi %s1243_s6, %s1433_s6   ;;  %s1168_s5 = sphi %s1241_s5, %s1432_s5   ;;  %s1164_s0 = sphi %s1239_s0, %s1431_s0  }
  0x18   : > { %p32_p6 = scmp.ge.s32.totalorder %s31_s1, 4  ;;  %s38_s11 = sld [smem:[#allocation3 + %s1180_s8]] }
  0x19   : > { %p52_p7 = scmp.ne.s32.totalorder %s1172_s6, %s1168_s5  ;;  %p53_p8 = scmp.eq.s32.totalorder %s1184_s9, 0 }
  0x1a   : > { %s1437_s1 = smov (%p32_p6, %s31_s1), 0  ;;  %p58_p9 = scmp.ne.s32.totalorder %s1168_s5, %s1164_s0 }
  0x1b   : > { %s39_s12 = sld [smem:[#allocation3 + %s1437_s1]]  ;;  %p59_p10 = scmp.eq.s32.totalorder %s895_s10, 0 }
  0x1c   : > { %s110_s14 = sand.u32 1, %s1172_s6   ;;  %p54_p12 = por %p53_p8, %p52_p7 }
  0x1d   : > { %p1277_p11 = por %p59_p10, %p58_p9  ;;  %s45_s15 = sadd.s32 1, %s1172_s6 }
  0x1e   : > { %p1021_p13 = scmp.lt.s32.totalorder %s1184_s9, 4  ;;  %s899_s17 = sshll.u32 %s110_s14, 5 }
  0x1f   : > { %s1427_s13 = scalar_select %p1277_p11, 1, 0 }
  0x20   : > { %p1284_p1 = pnand %p1021_p13, %p54_p12  ;;  %p902_p2 = scmp.ge.s32.totalorder %s1184_s9, 1 }
  0x21   : > { %s40_s16 = ssub.s32 %s38_s11, %s39_s12  ;;  %p133_p3 = scmp.lt.s32.totalorder %s1184_s9, 5 }
  0x22   : > { %p43_p0 = scmp.eq.s32.totalorder %s40_s16, 0  ;;  %s114_s23 = scalar_lea.vmem [#allocation5], %s899_s17 }
  0x23   : > { %s1011_s19 = scalar_select %p54_p12, [#allocation3], [#allocation7] }
  0x24   : > { %s1289_s20 = scalar_select %p43_p0, %s1172_s6, %s45_s15  }
  0x25   : > { %s1012_s21 = scalar_select %p54_p12, %s1180_s8, 0 }
  0x26   : > { %s1439_s19 = smov (!%p1021_p13, %s1011_s19), [#allocation8]  ;;  %s125_s24 = sshll.u32 %s114_s23, 4  ;;  %s1298_s24 = int_to_ptr.vmem [resolvable:$true] %s125_s24 }
  0x27   : > { %s1441_s21 = smov (!%p1021_p13, %s1012_s21), 0  ;;  %p1294_p4 = pnand %p902_p2, %p133_p3 }
  0x28   : > { %s115_s22 = sld [smem:[%s1439_s19 + %s1441_s21]]  ;;  %s1305_s30 = scalar_lea.sflag [#allocation6], %s110_s14 }
  0x29   : > { %p1104_p6 = pneg %p1284_p1  ;;  %s1107_s11 = scalar_lea.hbm %s1423_s2, 1024 }
  0x2e   : > { %s925_s26 = sshll.u32 %s115_s22, 9 }
  0x2f   : > { %s1303_s29 = scalar_lea.hbm %s1423_s2, %s925_s26 }
  0x30   : > { %s1102_s4 = scalar_lea.hbm %s1303_s29, 512  ;;  %p1108_p9 = scmp.lt.u32.totalorder %s1303_s29, %s1423_s2 }
  0x31   : > { %p1103_p5 = scmp.ne.s32.totalorder %s1303_s29, %s1102_s4  ;;  %p1109_p10 = scmp.lt.u32.totalorder %s1107_s11, %s1102_s4 }
  0x32   : > { %p1111_p13 = scmp.lt.u32.totalorder %s1102_s4, %s1303_s29 }
  0x33   : > { %p1105_p7 = pnand %p1104_p6, %p1103_p5  ;;  %p1110_p12 = por %p1109_p10, %p1108_p9 }
  0x35   : > { %p1106_p8 = pneg %p1105_p7  ;;  %p1112_p0 = por %p1111_p13, %p1110_p12 }
  0x37   : > { %p1113_p2 = pnand %p1112_p0, %p1106_p8 }
  0x39   : > { %1116 = shalt.err (!%p1113_p2)
}
  0x3a   : > { %s1117_s14 = scalar_lea.vmem %s1298_s24, 512  ;;  %s1188_s16 = smov [#allocation5]  }
  0x3b   : > { %p1118_p3 = scmp.ne.s32.totalorder %s1298_s24, %s1117_s14  ;;  %s1122_s17 = sshll.u32 %s1188_s16, 4  ;;  %s1123_s17 = int_to_ptr.vmem [resolvable:$false] %s1122_s17 }
  0x3c   : > { %s1124_s19 = scalar_lea.vmem %s1123_s17, 1024  ;;  %p1125_p11 = scmp.lt.s32.totalorder %s1298_s24, %s1123_s17 }
  0x3d   : > { %p1120_p5 = pnand %p1118_p3, %p1104_p6  ;;  %p1126_p9 = scmp.lt.s32.totalorder %s1124_s19, %s1117_s14 }
  0x3f   : > { %p1121_p7 = pneg %p1120_p5  ;;  %p1127_p10 = por %p1126_p9, %p1125_p11 }
  0x41   : > { %p1128_p12 = pnand %p1127_p10, %p1121_p7 }
  0x43   : > { %1131 = shalt.err (!%p1128_p12)
}
  0x44   : > { %s1189_s21 = smov 64   ;;  %s1190_s22 = smov 4  }
  0x45   : > { %1020 = dma.hbm_to_vmem [thread:$0]  (!%p1284_p1), %s1303_s29, 512, %s1298_s24, %s1305_s30, %s1189_s21, %s1189_s21, %s1190_s22  }
  0x46   : > { %137 = sbr.rel (%p1294_p4) target bundleno = 563 (0x233), region = 24  ;;  %s139_s23 = sand.u32 (!%p1294_p4), 1, %s1168_s5  }
  0x47   : > { %s903_s26 = sshll.u32 (!%p1294_p4), %s139_s23, 5  ;;  %s140_s27 = scalar_lea.sflag (!%p1294_p4), [#allocation6], %s139_s23 }
  0x48   : > { %s1336_s28 = scalar_lea.vmem (!%p1294_p4), [#allocation5], %s903_s26  ;;  %p1430_p11 = scmp.ne.s32.totalorder (!%p1294_p4), %s1427_s13, 0 }
  0x4d   : > { %1159 = dma.done.wait (%p1430_p11), %s140_s27, 512  }
  0x4e   : > { %1161 = vsyncadd (%p1430_p11), %s140_s27, 4294966784  ;;  %s906_s4 = sshll.u32 %s1176_s7, 7  ;;  %v1191_v0 = vmov 0.0   ;;  %vm1192_vm0 = vmmov 0   ;;  %v201_v1 = vlaneseq  ;;  %s1193_s17 = smov 1.0   ;;  %v1078_v47 = vld [vmem:[%s1336_s28] sm:$0xff]  }
  0x4f   : > { %947 = vmatprep.subr.bf16.mxu0 %v1191_v0  ;;  %953 = vmatprep.subr.bf16.mxu1 %v1191_v0  ;;  %s180_s18 = sld [smem:[#allocation4 + %s906_s4]]  ;;  %s182_s24 = sadd.s32 1, %s906_s4  ;;  %v1079_v48 = vld [vmem:[%s1336_s28 + $0x8] sm:$0xff]   ;;  %vm320_vm7 = vcmask 130048   ;;  %v1080_v49 = vld [vmem:[%s1336_s28 + $0x10] sm:$0xff]   ;;  %v1081_v50 = vld [vmem:[%s1336_s28 + $0x18] sm:$0xff]  }
  0x50   : > { %s1345_s25 = sld [smem:[#allocation4 + %s182_s24]]  ;;  %s185_s29 = sadd.s32 2, %s906_s4  ;;  %949 = vmatprep.mubr.msk.bf16.mxu0 %vm1192_vm0, %v1191_v0  ;;  %955 = vmatprep.mubr.msk.bf16.mxu1 %vm1192_vm0, %v1191_v0  ;;  %v205_v2 = vand.u32 127, %v201_v1  ;;  %v202_v4 = vshrl.u32 %v201_v1, 7  ;;  %vm795_vm14 = vcmask 55296  }
  0x51   : > { %s186_s13 = sld [smem:[#allocation4 + %s185_s29]]  ;;  %s188_s30 = sadd.s32 3, %s906_s4 }
  0x52   : > { %s189_s0 = sld [smem:[#allocation4 + %s188_s30]]  ;;  %v1354_v3 = vcvt.s32.f32 %v205_v2  ;;  %v203_v5 = vcvt.s32.f32 %v202_v4  ;;  %v207_v11 = vadd.s32 8, %v202_v4  ;;  %p169_p1 = scmp.lt.s32.totalorder %s1176_s7, 3 }
  0x54   : > { %v208_v17 = vcvt.s32.f32 %v207_v11  ;;  %s1443_s7 = smov (!%p169_p1, %s1176_s7), 3 }
  0x55   : > { %s181_s10 = smul.f32 0.25, %s180_s18  ;;  %s926_s28 = sshll.u32 %s1443_s7, 5 }
  0x56   : > { %s184_s11 = smul.f32 0.25, %s1345_s25 }
  0x57   : > { %s187_s12 = smul.f32 0.25, %s186_s13  ;;  %v234_v7 = vstv %s181_s10 }
  0x58   : > { %s190_s15 = smul.f32 0.25, %s189_s0  ;;  %v211_v51 = vstv %s184_s11 }
  0x59   : > { %s191_s14 = ssub.f32 %s187_s12, %s181_s10  ;;  %s176_s10 = scalar_lea.vmem %s1424_s3, %s926_s28 }
  0x5a   : > { %s193_s16 = ssub.f32 %s190_s15, %s184_s11 }
  0x5b   : > { %s192_s19 = smax.f32 %s1193_s17, %s191_s14 }
  0x5c   : > { %s194_s21 = smax.f32 %s1193_s17, %s193_s16  ;;  %s197_s22 = smul.f32 0.14285715, %s192_s19 }
  0x5d   : > { %s1356_s23 = smul.f32 0.14285715, %s194_s21 }
  0x5e   : > { %v232_v6 = vstv %s197_s22  ;;  %s236_s26 = smul.f32 0.5, %s197_s22 }
  0x5f   : > { %v209_v8 = vstv %s1356_s23  ;;  %v233_v9 = vmul.f32 %v232_v6, %v1354_v3  ;;  %s280_s27 = smul.f32 1.5, %s197_s22  ;;  %v1194_v6 = vmov 0.0|0.0  }
  0x60   : > { %v1360_v10 = vmul.f32 %v209_v8, %v203_v5  ;;  %s239_s4 = smul.f32 0.5, %s236_s26 }
  0x61   : > { %v235_v12 = vadd.f32 %v234_v7, %v233_v9  ;;  %s283_s18 = smul.f32 0.5, %s280_s27 }
  0x62   : > { %v240_v13 = vstv %s239_s4  ;;  %s213_s24 = smul.f32 0.5, %s1356_s23  ;;  %v212_v52 = vadd.f32 %v211_v51, %v1360_v10 }
  0x63   : > { %v241_v14 = vadd.f32 %v240_v13, %v235_v12  ;;  %v284_v15 = vstv %s283_s18  ;;  %s261_s29 = smul.f32 1.5, %s1356_s23 }
  0x64   : > { %v285_v16 = vadd.f32 %v284_v15, %v235_v12  ;;  %s216_s13 = smul.f32 0.5, %s213_s24 }
  0x65   : > { %v247_v18 = vmax.f32 %v241_v14, 0.0  ;;  %vm242_vm1 = vcmp.ge.f32.partialorder %v241_v14, -1.0  ;;  %vm243_vm2 = vcmp.le.f32.partialorder %v241_v14, 16.0  ;;  %s264_s30 = smul.f32 0.5, %s261_s29 }
  0x66   : > { %v291_v19 = vmax.f32 %v285_v16, 0.0  ;;  %vm286_vm3 = vcmp.ge.f32.partialorder %v285_v16, -1.0  ;;  %vm287_vm4 = vcmp.le.f32.partialorder %v285_v16, 16.0  ;;  %vm244_vm5 = vmand %vm242_vm1, %vm243_vm2  ;;  %v217_v53 = vstv %s216_s13 }
  0x67   : > { %v248_v20 = vmin.f32 %v247_v18, 15.0  ;;  %vm288_vm6 = vmand %vm286_vm3, %vm287_vm4  ;;  %v908_v32 = vsel %vm244_vm5, 1.0, %v1191_v0  ;;  %v218_v54 = vadd.f32 %v217_v53, %v212_v52  ;;  %v265_v55 = vstv %s264_s30 }
  0x68   : > { %v292_v21 = vmin.f32 %v291_v19, 15.0  ;;  %v910_v37 = vsel %vm288_vm6, 1.0, %v1191_v0  ;;  %v266_v56 = vadd.f32 %v265_v55, %v212_v52 }
  0x69   : > { %v249_v22 = vsub.f32 %v248_v20, %v203_v5  ;;  %v250_v23 = vsub.f32 %v248_v20, %v208_v17  ;;  %v224_v57 = vmax.f32 %v218_v54, 0.0  ;;  %vm219_vm8 = vcmp.ge.f32.partialorder %v218_v54, -1.0 }
  0x6a   : > { %v293_v24 = vsub.f32 %v292_v21, %v203_v5  ;;  %v294_v25 = vsub.f32 %v292_v21, %v208_v17  ;;  %v272_v58 = vmax.f32 %v266_v56, 0.0  ;;  %vm220_vm9 = vcmp.le.f32.partialorder %v218_v54, 16.0 }
  0x6b   : > { %v251_v26 = vand.u32 2147483647, %v249_v22  ;;  %v252_v27 = vand.u32 2147483647, %v250_v23  ;;  %v225_v59 = vmin.f32 %v224_v57, 15.0  ;;  %vm267_vm10 = vcmp.ge.f32.partialorder %v266_v56, -1.0  ;;  %vm221_vm12 = vmand %vm219_vm8, %vm220_vm9 }
  0x6c   : > { %v295_v28 = vand.u32 2147483647, %v293_v24  ;;  %v296_v29 = vand.u32 2147483647, %v294_v25  ;;  %v273_v60 = vmin.f32 %v272_v58, 15.0  ;;  %vm268_vm11 = vcmp.le.f32.partialorder %v266_v56, 16.0 }
  0x6d   : > { %v253_v30 = vsub.f32 1.0, %v251_v26  ;;  %v254_v31 = vsub.f32 1.0, %v252_v27  ;;  %v226_v61 = vsub.f32 %v225_v59, %v1354_v3  ;;  %v907_v7 = vsel %vm221_vm12, 1.0, %v1191_v0  ;;  %vm269_vm13 = vmand %vm267_vm10, %vm268_vm11 }
  0x6e   : > { %v297_v33 = vsub.f32 1.0, %v295_v28  ;;  %v298_v34 = vsub.f32 1.0, %v296_v29  ;;  %v274_v62 = vsub.f32 %v273_v60, %v1354_v3  ;;  %v909_v9 = vsel %vm269_vm13, 1.0, %v1191_v0 }
  0x6f   : > { %v255_v35 = vmax.f32 %v253_v30, 0.0  ;;  %v256_v36 = vmax.f32 %v254_v31, 0.0  ;;  %v227_v63 = vand.u32 2147483647, %v226_v61 }
  0x70   : > { %v299_v38 = vmax.f32 %v297_v33, 0.0  ;;  %v300_v39 = vmax.f32 %v298_v34, 0.0  ;;  %v275_v1 = vand.u32 2147483647, %v274_v62 }
  0x71   : > { %v257_v40 = vmul.f32 %v908_v32, %v255_v35  ;;  %v258_v41 = vmul.f32 %v908_v32, %v256_v36  ;;  %v228_v2 = vsub.f32 1.0, %v227_v63 }
  0x72   : > { %v301_v42 = vmul.f32 %v910_v37, %v299_v38  ;;  %v302_v43 = vmul.f32 %v910_v37, %v300_v39  ;;  %v276_v5 = vsub.f32 1.0, %v275_v1 }
  0x73   : > { %v229_v4 = vmax.f32 %v228_v2, 0.0 }
  0x74   : > { %v303_v44 = vadd.f32 %v301_v42, %v257_v40  ;;  %v304_v45 = vadd.f32 %v302_v43, %v258_v41  ;;  %v277_v3 = vmax.f32 %v276_v5, 0.0 }
  0x75   : > { %v230_v8 = vmul.f32 %v907_v7, %v229_v4 }
  0x76   : > { %v314_v46 = vpack.c.bf16 %v304_v45, %v303_v44  ;;  %v278_v10 = vmul.f32 %v909_v9, %v277_v3 }
  0x78   : > { %948 = vmatpush3.bf16.msra.mxu0 %v314_v46  ;;  %954 = vmatpush3.bf16.msra.mxu1 %v314_v46  ;;  %v279_v11 = vadd.f32 %v278_v10, %v230_v8 }
  0x79   : > { %959 = vmatprep.subr.bf16.mxu0 %v1191_v0  ;;  %965 = vmatprep.subr.bf16.mxu1 %v1191_v0 }
  0x7a   : > { %v305_v22 = vmul.f32 0.25, %v279_v11 }
  0x7b   : > { %950 = vmatmul.mubr.msk.bf16.vlgmr.msra.gmra.mrb[0].mxu0 %vm320_vm7, %v1078_v47  ;;  %956 = vmatmul.mubr.msk.bf16.vlgmr.msra.gmra.mrb[0].mxu1 %vm320_vm7, %v1079_v48 }
  0x7c   : > { %960 = vmatpush3.bf16.msra.mxu0 %v314_v46  ;;  %966 = vmatpush3.bf16.msra.mxu1 %v314_v46 }
  0x7d   : > { %961 = vmatprep.mubr.msk.bf16.mxu0 %vm1192_vm0, %v1191_v0  ;;  %967 = vmatprep.mubr.msk.bf16.mxu1 %vm1192_vm0, %v1191_v0 }
  0x7e   : > { %999 = vmatprep.subr.bf16.mxu0 %v1194_v6  ;;  %1002 = vmatprep.subr.bf16.mxu1 %v1194_v6 }
  0x83   : > { %962 = vmatmul.mubr.msk.bf16.vlgmr.msra.gmra.mrb[4].mxu0 %vm320_vm7, %v1080_v49  ;;  %968 = vmatmul.mubr.msk.bf16.vlgmr.msra.gmra.mrb[4].mxu1 %vm320_vm7, %v1081_v50 }
  0x84   : > { %975 = vmatprep.mubr.msk.f32.mxu0 %vm1192_vm0, %v1191_v0  ;;  %982 = vmatprep.mubr.msk.f32.mxu1 %vm1192_vm0, %v1191_v0 }
 0x14e   : > { %v358_v12 = vpop.f32.mrb[0].mxu0  ;;  %v407_v13 = vpop.f32.mrb[0].mxu1 }
 0x14f   : > { %v951_v14 = vpop.f32.mrb[1].mxu0  ;;  %v957_v15 = vpop.f32.mrb[1].mxu1 }
 0x150   : > { %v361_v16 = vpop.f32.mrb[2].mxu0  ;;  %v410_v17 = vpop.f32.mrb[2].mxu1 }
 0x151   : > { %v1000_v18 = vpack.c.bf16 %v361_v16, %v358_v12  ;;  %v1003_v19 = vpack.c.bf16 %v410_v17, %v407_v13  ;;  %v952_v20 = vpop.f32.mrb[3].mxu0  ;;  %v958_v21 = vpop.f32.mrb[3].mxu1 }
 0x153   : > { %1001 = vmatpush3.bf16.msra.mxu0 %v1000_v18  ;;  %1004 = vmatpush3.bf16.msra.mxu1 %v1003_v19 }
 0x154   : > { %1005 = vmatprep.subr.bf16.mxu0 %v1194_v6  ;;  %1008 = vmatprep.subr.bf16.mxu1 %v1194_v6 }
 0x156   : > { %v456_v23 = vpop.f32.mrb[4].mxu0  ;;  %v505_v24 = vpop.f32.mrb[4].mxu1  ;;  %976 = vmatmul.mubr.msk.f32.vlgmr.msra.gmra.mrb[8].mxu0 %vm320_vm7, %v305_v22  ;;  %983 = vmatmul.mubr.msk.f32.vlgmr.msra.gmra.mrb[8].mxu1 %vm320_vm7, %v305_v22 }
 0x157   : > { %v963_v25 = vpop.f32.mrb[5].mxu0  ;;  %v969_v26 = vpop.f32.mrb[5].mxu1  ;;  %989 = vmatprep.mubr.msk.f32.mxu0 %vm1192_vm0, %v1191_v0  ;;  %996 = vmatprep.mubr.msk.f32.mxu1 %vm1192_vm0, %v1191_v0 }
 0x158   : > { %v459_v27 = vpop.f32.mrb[6].mxu0  ;;  %v508_v28 = vpop.f32.mrb[6].mxu1 }
 0x159   : > { %v1006_v29 = vpack.c.bf16 %v459_v27, %v456_v23  ;;  %v1009_v30 = vpack.c.bf16 %v508_v28, %v505_v24  ;;  %v964_v31 = vpop.f32.mrb[7].mxu0  ;;  %v970_v32 = vpop.f32.mrb[7].mxu1 }
 0x15b   : > { %1007 = vmatpush3.bf16.msra.mxu0 %v1006_v29  ;;  %1010 = vmatpush3.bf16.msra.mxu1 %v1009_v30 }
 0x15e   : > { %990 = vmatmul.mubr.msk.f32.vlgmr.msra.gmra.mrb[10].mxu0 %vm320_vm7, %v305_v22  ;;  %997 = vmatmul.mubr.msk.f32.vlgmr.msra.gmra.mrb[10].mxu1 %vm320_vm7, %v305_v22 }
 0x229   : > { %v581_v0 = vpop.f32.mrb[8].mxu0  ;;  %v651_v33 = vpop.f32.mrb[8].mxu1 }
 0x22a   : > { %796 = vst.msk [vmem:[%s176_s10] sm:$0x7f] %vm795_vm14, %v581_v0  ;;  %797 = vst.msk [vmem:[%s176_s10 + $0x8] sm:$0x7f] %vm795_vm14, %v651_v33  ;;  %v977_v34 = vpop.f32.mrb[9].mxu0  ;;  %v984_v35 = vpop.f32.mrb[9].mxu1 }
 0x231   : > { %v721_v36 = vpop.f32.mrb[10].mxu0  ;;  %v791_v37 = vpop.f32.mrb[10].mxu1 }
 0x232   : > { %798 = vst.msk [vmem:[%s176_s10 + $0x10] sm:$0x7f] %vm795_vm14, %v721_v36  ;;  %799 = vst.msk [vmem:[%s176_s10 + $0x18] sm:$0x7f] %vm795_vm14, %v791_v37  ;;  %v991_v38 = vpop.f32.mrb[11].mxu0  ;;  %v998_v39 = vpop.f32.mrb[11].mxu1 }
 0x233 PF: > { %s22_s9 = sadd.s32 1, %s1184_s9   ;;  %s1431_s0 = smov %s1168_s5 }
 0x234   : > { %p19_p4 = scmp.ge.s32.totalorder %s22_s9, 6   ;;  %s1432_s5 = smov %s1172_s6 }
 0x235   : > { %s1433_s6 = smov %s1289_s20  ;;  %s1434_s7 = smov %s1180_s8 }
 0x236   : > { %s1435_s8 = smov %s1437_s1  ;;  %21 = sbr.rel (!%p19_p4) target bundleno = 23 (0x17), region = 64 }
 0x23d   :  { %830 = vsyncpa [#allocation6], 1 }
 0x23e   :  { %832 = vsyncpa [#allocation6 + $0x1], 1 }

</bundles_post_ra>
